<compile_context>
chip_gen: v7x
topology: tpu7x:2x2x1
jax: 0.10.0
libtpu: 0.0.40
codegen_flags: <defaults>
</compile_context>

<pallas_src>
import functools

import jax
import jax.numpy as jnp
from jax.experimental import pallas as pl
from jax.experimental.pallas import tpu as pltpu

WINDOW_SIZE = 5
C1 = 0.01 ** 2
C2 = 0.03 ** 2


def _ssim_kernel(x_ref, y_ref, out_ref, xs_ref, ys_ref, *,
                 h, w, k, groups, bt, steps, batch):
    """One grid step: bt images -> one (1,1,128) partial-(sum of per-image means)."""
    pad = WINDOW_SIZE // 2
    wp = w + 2 * pad                 # per-image lane pitch inside the packed slab
    packed_w = k * wp
    out_w = packed_w - 2 * pad
    step = pl.program_id(0)

    # ---- Pack this block's images into zero-padded, lane-packed f32 slabs ----
    # The 2-px zero border and the 4-column seams between packed images are
    # rebuilt in VMEM every step -> no wrapper-side jnp.pad / extra HBM pass.
    xs_ref[...] = jnp.zeros(xs_ref.shape, jnp.float32)
    ys_ref[...] = jnp.zeros(ys_ref.shape, jnp.float32)

    tail = batch - (steps - 1) * bt  # number of valid image slots in the last step
    for s in range(bt):
        g, j = divmod(s, k)
        off = j * wp + pad

        def _write(s=s, g=g, off=off):
            xs_ref[g, pad:pad + h, off:off + w] = x_ref[s].astype(jnp.float32)
            ys_ref[g, pad:pad + h, off:off + w] = y_ref[s].astype(jnp.float32)

        if s < tail:
            _write()                              # always a valid image
        else:
            pl.when(step < steps - 1)(_write)     # slot only invalid on tail step

    xp = xs_ref[...]                 # (groups, h+4, packed_w), zeros in pads/seams
    yp = ys_ref[...]

    # ---- Horizontal (lane-axis) 5-tap pass -----------------------------------
    # NOTE(perf): keep "shift x,y then multiply the shifted copies"
    # (10 lane shifts + 15 multiplies).  Pre-multiplying xx/yy/xy and shifting
    # five product slabs trades VALU work (4 slots) for XLU shifts (2 units) and
    # regresses on v6e/v7x — do not "clean this up".
    hx = hy = hxx = hyy = hxy = None
    for dx in range(WINDOW_SIZE):
        sx = xp[:, :, dx:dx + out_w]
        sy = yp[:, :, dx:dx + out_w]
        if dx == 0:
            hx, hy = sx, sy
            hxx, hyy, hxy = sx * sx, sy * sy, sx * sy
        else:
            hx = hx + sx
            hy = hy + sy
            hxx = hxx + sx * sx
            hyy = hyy + sy * sy
            hxy = hxy + sx * sy

    # ---- Vertical (sublane-axis) 5-tap pass -----------------------------------
    def vsum(a):  # (groups, h+4, out_w) -> (groups, h, out_w)
        acc = a[:, 0:h, :]
        for dy in range(1, WINDOW_SIZE):
            acc = acc + a[:, dy:dy + h, :]
        return acc

    inv_n = 1.0 / float(WINDOW_SIZE * WINDOW_SIZE)
    mu1 = vsum(hx) * inv_n
    mu2 = vsum(hy) * inv_n
    sigma1_sq = vsum(hxx) * inv_n - mu1 * mu1
    sigma2_sq = vsum(hyy) * inv_n - mu2 * mu2
    sigma12 = vsum(hxy) * inv_n - mu1 * mu2

    num = (2.0 * mu1 * mu2 + C1) * (2.0 * sigma12 + C2)
    den = (mu1 * mu1 + mu2 * mu2 + C1) * (sigma1_sq + sigma2_sq + C2)
    # Approx reciprocal on the EUP slot + one Newton step (~1e-7 of exact divide,
    # which would otherwise burn the saturated VALU slot).
    r = pl.reciprocal(den, approx=True)
    r = r * (2.0 - den * r)
    ssim_map = num * r               # (groups, h, out_w)

    # ---- Mask seam columns and out-of-range (tail) image slots, then reduce ---
    col = jax.lax.broadcasted_iota(jnp.int32, (1, 1, out_w), 2)
    grp = jax.lax.broadcasted_iota(jnp.int32, (groups, 1, 1), 0)
    mask = jnp.zeros((groups, 1, out_w), jnp.float32)
    for j in range(k):
        col_ok = (col >= j * wp) & (col < j * wp + w)          # image j's columns
        img_ok = (step * bt + grp * k + j) < batch             # image exists
        mask = mask + jnp.where(col_ok & img_ok, 1.0, 0.0)

    part = jnp.sum(ssim_map * mask) * (1.0 / float(h * w))

    # One lane-dense (1,1,128) partial row per step; no cross-step carried state,
    # so the batch grid axis stays "parallel" (v7x megacore can split it).
    out_ref[...] = jnp.zeros((1, 1, 128), jnp.float32) + part


def _plan(batch, h, w):
    """Choose lane-packing factor k, groups-per-step, grid steps and VMEM limit."""
    pad = WINDOW_SIZE // 2
    wp = w + 2 * pad
    # Lane-pack k images per group so small images fill the 128-wide vreg lanes.
    k = max(1, min(batch, 128 // wp))
    groups_total = -(-batch // k)

    try:
        cap = int(pltpu.get_tpu_info().vmem_capacity_bytes)
    except Exception:  # pragma: no cover - conservative fallback (v7x per-TC VMEM)
        cap = 64 * 1024 * 1024
    vmem_limit = min(cap * 3 // 4, 96 * 1024 * 1024)

    # f32 bytes of one packed group slab after (8,128) layout padding.
    packed_w = k * wp
    slab = (-(-(h + 2 * pad) // 8) * 8) * (-(-packed_w // 128) * 128) * 4
    # ~12 live slab-sized intermediates + 2 padded scratches + double-buffered
    # input blocks ~= 16 slab equivalents; keep ~40% headroom under the limit.
    g_vmem = max(1, (vmem_limit * 3 // 5) // (16 * slab))
    g = min(groups_total, g_vmem, max(1, 32 // k))   # also bound unrolled scatter
    if groups_total >= 2:
        # v7x: keep >= 2 grid steps so both TensorCores get work on the
        # "parallel" batch axis (no effect on single-TC v5e/v6e).
        g = min(g, -(-groups_total // 2))
    steps = -(-groups_total // g)
    return k, g, steps, vmem_limit


def ssim_loss(img1, img2):
    """img1, img2: (N, 1, H, W) arrays. Returns scalar loss = 1 - ssim."""
    assert img1.shape == img2.shape
    n, c, h, w = img1.shape
    assert c == 1, "PyTorch reference (groups=1, weight (1,1,5,5)) requires C == 1"
    batch = n * c
    pad = WINDOW_SIZE // 2

    # Native dtype inputs (no wrapper-side upcast / pad); the kernel upcasts to
    # f32 on load — matters most on bandwidth-poor v5e.
    x = img1.reshape(batch, h, w)
    y = img2.reshape(batch, h, w)

    k, gpb, steps, vmem_limit = _plan(batch, h, w)
    bt = min(gpb * k, batch)         # image slots per grid step (<= batch)
    packed_w = k * (w + 2 * pad)

    kernel = functools.partial(
        _ssim_kernel, h=h, w=w, k=k, groups=gpb, bt=bt, steps=steps, batch=batch)

    partials = pl.pallas_call(
        kernel,
        out_shape=jax.ShapeDtypeStruct((steps, 1, 128), jnp.float32),
        grid_spec=pltpu.PrefetchScalarGridSpec(
            num_scalar_prefetch=0,
            grid=(steps,),
            in_specs=[
                pl.BlockSpec((bt, h, w), lambda b: (b, 0, 0)),
                pl.BlockSpec((bt, h, w), lambda b: (b, 0, 0)),
            ],
            out_specs=pl.BlockSpec((1, 1, 128), lambda b: (b, 0, 0)),
            scratch_shapes=[
                pltpu.VMEM((gpb, h + 2 * pad, packed_w), jnp.float32),
                pltpu.VMEM((gpb, h + 2 * pad, packed_w), jnp.float32),
            ],
        ),
        compiler_params=pltpu.CompilerParams(
            dimension_semantics=("parallel",),
            vmem_limit_bytes=int(vmem_limit),
        ),
    )(x, y)

    # Each step wrote (sum of per-image SSIM means of its valid images).
    return 1.0 - jnp.sum(partials[:, 0, 0]) / float(batch)


def _ssim_loss_ref(img1, img2):
    """Pure-JAX reference replicating the PyTorch code (for sanity check)."""
    pad = WINDOW_SIZE // 2
    win = jnp.ones((WINDOW_SIZE, WINDOW_SIZE), jnp.float32) / (WINDOW_SIZE ** 2)

    def conv(x):  # x: (N,1,H,W)
        return jax.lax.conv_general_dilated(
            x, win[None, None], (1, 1), [(pad, pad), (pad, pad)],
            dimension_numbers=("NCHW", "OIHW", "NCHW"),
            precision=jax.lax.Precision.HIGHEST)

    mu1, mu2 = conv(img1), conv(img2)
    s1 = conv(img1 * img1) - mu1 * mu1
    s2 = conv(img2 * img2) - mu2 * mu2
    s12 = conv(img1 * img2) - mu1 * mu2
    m = (2 * mu1 * mu2 + C1) * (2 * s12 + C2) / (
        (mu1 * mu1 + mu2 * mu2 + C1) * (s1 + s2 + C2))
    return 1.0 - m.mean()


if __name__ == "__main__":
    key = jax.random.PRNGKey(0)
    k1, k2 = jax.random.split(key)
    # Small shapes consistent with the module: NCHW with a single channel.
    img1 = jax.random.uniform(k1, (2, 1, 16, 16), dtype=jnp.float32)
    img2 = jax.random.uniform(k2, (2, 1, 16, 16), dtype=jnp.float32)

    loss = jax.block_until_ready(ssim_loss(img1, img2))
    ref = jax.block_until_ready(_ssim_loss_ref(img1, img2))
    assert jnp.allclose(loss, ref, rtol=1e-5, atol=1e-5), (loss, ref)
    print("KERNEL_OK")
</pallas_src>

<mosaic_0001>
module attributes {stable_mosaic.version = 11 : i64} {
  func.func @_ssim_kernel(%arg0: i32, %arg1: memref<2x16x16xf32, #tpu.memory_space<vmem>>, %arg2: memref<2x16x16xf32, #tpu.memory_space<vmem>>, %arg3: memref<1x1x128xf32, #tpu.memory_space<vmem>>, %arg4: memref<1x20x40xf32, #tpu.memory_space<vmem>>, %arg5: memref<1x20x40xf32, #tpu.memory_space<vmem>>) attributes {dimension_semantics = [#tpu.dimension_semantics<parallel>], iteration_bounds = array<i64: 1>, scalar_prefetch = 0 : i64, scratch_operands = 2 : i64, tpu.core_type = #tpu.core_type<tc>, window_params = [{transform_indices = @transform_0, window_bounds = array<i64: 2, 16, 16>}, {transform_indices = @transform_1, window_bounds = array<i64: 2, 16, 16>}, {transform_indices = @transform_2, window_bounds = array<i64: 1, 1, 128>}]} {
    %cst = arith.constant 0.000000e+00 : f32
    %0 = vector.broadcast %cst : f32 to vector<1x20x40xf32>
    %c0 = arith.constant 0 : index
    %c0_0 = arith.constant 0 : index
    %c0_1 = arith.constant 0 : index
    %1 = vector.load %arg4[%c0, %c0_0, %c0_1] : memref<1x20x40xf32, #tpu.memory_space<vmem>>, vector<1x20x40xf32>
    tpu.vector_store %arg4[%c0, %c0_0, %c0_1], %0 {strides = array<i32>} : memref<1x20x40xf32, #tpu.memory_space<vmem>>, vector<1x20x40xf32>,
    %cst_2 = arith.constant 0.000000e+00 : f32
    %2 = vector.broadcast %cst_2 : f32 to vector<1x20x40xf32>
    %c0_3 = arith.constant 0 : index
    %c0_4 = arith.constant 0 : index
    %c0_5 = arith.constant 0 : index
    %3 = vector.load %arg5[%c0_3, %c0_4, %c0_5] : memref<1x20x40xf32, #tpu.memory_space<vmem>>, vector<1x20x40xf32>
    tpu.vector_store %arg5[%c0_3, %c0_4, %c0_5], %2 {strides = array<i32>} : memref<1x20x40xf32, #tpu.memory_space<vmem>>, vector<1x20x40xf32>,
    %c0_6 = arith.constant 0 : index
    %c0_7 = arith.constant 0 : index
    %c0_8 = arith.constant 0 : index
    %4 = vector.load %arg1[%c0_6, %c0_7, %c0_8] : memref<2x16x16xf32, #tpu.memory_space<vmem>>, vector<1x16x16xf32>
    %5 = vector.shape_cast %4 : vector<1x16x16xf32> to vector<16x16xf32>
    %c0_9 = arith.constant 0 : index
    %c2 = arith.constant 2 : index
    %c2_10 = arith.constant 2 : index
    %6 = vector.load %arg4[%c0_9, %c2, %c2_10] : memref<1x20x40xf32, #tpu.memory_space<vmem>>, vector<1x16x16xf32>
    %7 = vector.shape_cast %6 : vector<1x16x16xf32> to vector<16x16xf32>
    %8 = vector.shape_cast %5 : vector<16x16xf32> to vector<1x16x16xf32>
    tpu.vector_store %arg4[%c0_9, %c2, %c2_10], %8 {strides = array<i32>} : memref<1x20x40xf32, #tpu.memory_space<vmem>>, vector<1x16x16xf32>,
    %c0_11 = arith.constant 0 : index
    %c0_12 = arith.constant 0 : index
    %c0_13 = arith.constant 0 : index
    %9 = vector.load %arg2[%c0_11, %c0_12, %c0_13] : memref<2x16x16xf32, #tpu.memory_space<vmem>>, vector<1x16x16xf32>
    %10 = vector.shape_cast %9 : vector<1x16x16xf32> to vector<16x16xf32>
    %c0_14 = arith.constant 0 : index
    %c2_15 = arith.constant 2 : index
    %c2_16 = arith.constant 2 : index
    %11 = vector.load %arg5[%c0_14, %c2_15, %c2_16] : memref<1x20x40xf32, #tpu.memory_space<vmem>>, vector<1x16x16xf32>
    %12 = vector.shape_cast %11 : vector<1x16x16xf32> to vector<16x16xf32>
    %13 = vector.shape_cast %10 : vector<16x16xf32> to vector<1x16x16xf32>
    tpu.vector_store %arg5[%c0_14, %c2_15, %c2_16], %13 {strides = array<i32>} : memref<1x20x40xf32, #tpu.memory_space<vmem>>, vector<1x16x16xf32>,
    %c1 = arith.constant 1 : index
    %c0_17 = arith.constant 0 : index
    %c0_18 = arith.constant 0 : index
    %14 = vector.load %arg1[%c1, %c0_17, %c0_18] : memref<2x16x16xf32, #tpu.memory_space<vmem>>, vector<1x16x16xf32>
    %15 = vector.shape_cast %14 : vector<1x16x16xf32> to vector<16x16xf32>
    %c0_19 = arith.constant 0 : index
    %c2_20 = arith.constant 2 : index
    %c22 = arith.constant 22 : index
    %16 = vector.load %arg4[%c0_19, %c2_20, %c22] : memref<1x20x40xf32, #tpu.memory_space<vmem>>, vector<1x16x16xf32>
    %17 = vector.shape_cast %16 : vector<1x16x16xf32> to vector<16x16xf32>
    %18 = vector.shape_cast %15 : vector<16x16xf32> to vector<1x16x16xf32>
    tpu.vector_store %arg4[%c0_19, %c2_20, %c22], %18 {strides = array<i32>} : memref<1x20x40xf32, #tpu.memory_space<vmem>>, vector<1x16x16xf32>,
    %c1_21 = arith.constant 1 : index
    %c0_22 = arith.constant 0 : index
    %c0_23 = arith.constant 0 : index
    %19 = vector.load %arg2[%c1_21, %c0_22, %c0_23] : memref<2x16x16xf32, #tpu.memory_space<vmem>>, vector<1x16x16xf32>
    %20 = vector.shape_cast %19 : vector<1x16x16xf32> to vector<16x16xf32>
    %c0_24 = arith.constant 0 : index
    %c2_25 = arith.constant 2 : index
    %c22_26 = arith.constant 22 : index
    %21 = vector.load %arg5[%c0_24, %c2_25, %c22_26] : memref<1x20x40xf32, #tpu.memory_space<vmem>>, vector<1x16x16xf32>
    %22 = vector.shape_cast %21 : vector<1x16x16xf32> to vector<16x16xf32>
    %23 = vector.shape_cast %20 : vector<16x16xf32> to vector<1x16x16xf32>
    tpu.vector_store %arg5[%c0_24, %c2_25, %c22_26], %23 {strides = array<i32>} : memref<1x20x40xf32, #tpu.memory_space<vmem>>, vector<1x16x16xf32>,
    %c0_27 = arith.constant 0 : index
    %c0_28 = arith.constant 0 : index
    %c0_29 = arith.constant 0 : index
    %24 = vector.load %arg4[%c0_27, %c0_28, %c0_29] : memref<1x20x40xf32, #tpu.memory_space<vmem>>, vector<1x20x40xf32>
    %c0_30 = arith.constant 0 : index
    %c0_31 = arith.constant 0 : index
    %c0_32 = arith.constant 0 : index
    %25 = vector.load %arg5[%c0_30, %c0_31, %c0_32] : memref<1x20x40xf32, #tpu.memory_space<vmem>>, vector<1x20x40xf32>
    %26 = vector.extract_strided_slice %24 {offsets = [0, 0, 0], sizes = [1, 20, 36], strides = [1, 1, 1]} : vector<1x20x40xf32> to vector<1x20x36xf32>
    %27 = vector.extract_strided_slice %25 {offsets = [0, 0, 0], sizes = [1, 20, 36], strides = [1, 1, 1]} : vector<1x20x40xf32> to vector<1x20x36xf32>
    %28 = arith.mulf %26, %26 : vector<1x20x36xf32>
    %29 = arith.mulf %27, %27 : vector<1x20x36xf32>
    %30 = arith.mulf %26, %27 : vector<1x20x36xf32>
    %31 = vector.extract_strided_slice %24 {offsets = [0, 0, 1], sizes = [1, 20, 36], strides = [1, 1, 1]} : vector<1x20x40xf32> to vector<1x20x36xf32>
    %32 = vector.extract_strided_slice %25 {offsets = [0, 0, 1], sizes = [1, 20, 36], strides = [1, 1, 1]} : vector<1x20x40xf32> to vector<1x20x36xf32>
    %33 = arith.addf %26, %31 : vector<1x20x36xf32>
    %34 = arith.addf %27, %32 : vector<1x20x36xf32>
    %35 = arith.mulf %31, %31 : vector<1x20x36xf32>
    %36 = arith.addf %28, %35 : vector<1x20x36xf32>
    %37 = arith.mulf %32, %32 : vector<1x20x36xf32>
    %38 = arith.addf %29, %37 : vector<1x20x36xf32>
    %39 = arith.mulf %31, %32 : vector<1x20x36xf32>
    %40 = arith.addf %30, %39 : vector<1x20x36xf32>
    %41 = vector.extract_strided_slice %24 {offsets = [0, 0, 2], sizes = [1, 20, 36], strides = [1, 1, 1]} : vector<1x20x40xf32> to vector<1x20x36xf32>
    %42 = vector.extract_strided_slice %25 {offsets = [0, 0, 2], sizes = [1, 20, 36], strides = [1, 1, 1]} : vector<1x20x40xf32> to vector<1x20x36xf32>
    %43 = arith.addf %33, %41 : vector<1x20x36xf32>
    %44 = arith.addf %34, %42 : vector<1x20x36xf32>
    %45 = arith.mulf %41, %41 : vector<1x20x36xf32>
    %46 = arith.addf %36, %45 : vector<1x20x36xf32>
    %47 = arith.mulf %42, %42 : vector<1x20x36xf32>
    %48 = arith.addf %38, %47 : vector<1x20x36xf32>
    %49 = arith.mulf %41, %42 : vector<1x20x36xf32>
    %50 = arith.addf %40, %49 : vector<1x20x36xf32>
    %51 = vector.extract_strided_slice %24 {offsets = [0, 0, 3], sizes = [1, 20, 36], strides = [1, 1, 1]} : vector<1x20x40xf32> to vector<1x20x36xf32>
    %52 = vector.extract_strided_slice %25 {offsets = [0, 0, 3], sizes = [1, 20, 36], strides = [1, 1, 1]} : vector<1x20x40xf32> to vector<1x20x36xf32>
    %53 = arith.addf %43, %51 : vector<1x20x36xf32>
    %54 = arith.addf %44, %52 : vector<1x20x36xf32>
    %55 = arith.mulf %51, %51 : vector<1x20x36xf32>
    %56 = arith.addf %46, %55 : vector<1x20x36xf32>
    %57 = arith.mulf %52, %52 : vector<1x20x36xf32>
    %58 = arith.addf %48, %57 : vector<1x20x36xf32>
    %59 = arith.mulf %51, %52 : vector<1x20x36xf32>
    %60 = arith.addf %50, %59 : vector<1x20x36xf32>
    %61 = vector.extract_strided_slice %24 {offsets = [0, 0, 4], sizes = [1, 20, 36], strides = [1, 1, 1]} : vector<1x20x40xf32> to vector<1x20x36xf32>
    %62 = vector.extract_strided_slice %25 {offsets = [0, 0, 4], sizes = [1, 20, 36], strides = [1, 1, 1]} : vector<1x20x40xf32> to vector<1x20x36xf32>
    %63 = arith.addf %53, %61 : vector<1x20x36xf32>
    %64 = arith.addf %54, %62 : vector<1x20x36xf32>
    %65 = arith.mulf %61, %61 : vector<1x20x36xf32>
    %66 = arith.addf %56, %65 : vector<1x20x36xf32>
    %67 = arith.mulf %62, %62 : vector<1x20x36xf32>
    %68 = arith.addf %58, %67 : vector<1x20x36xf32>
    %69 = arith.mulf %61, %62 : vector<1x20x36xf32>
    %70 = arith.addf %60, %69 : vector<1x20x36xf32>
    %71 = vector.extract_strided_slice %63 {offsets = [0, 0, 0], sizes = [1, 16, 36], strides = [1, 1, 1]} : vector<1x20x36xf32> to vector<1x16x36xf32>
    %72 = vector.extract_strided_slice %63 {offsets = [0, 1, 0], sizes = [1, 16, 36], strides = [1, 1, 1]} : vector<1x20x36xf32> to vector<1x16x36xf32>
    %73 = arith.addf %71, %72 : vector<1x16x36xf32>
    %74 = vector.extract_strided_slice %63 {offsets = [0, 2, 0], sizes = [1, 16, 36], strides = [1, 1, 1]} : vector<1x20x36xf32> to vector<1x16x36xf32>
    %75 = arith.addf %73, %74 : vector<1x16x36xf32>
    %76 = vector.extract_strided_slice %63 {offsets = [0, 3, 0], sizes = [1, 16, 36], strides = [1, 1, 1]} : vector<1x20x36xf32> to vector<1x16x36xf32>
    %77 = arith.addf %75, %76 : vector<1x16x36xf32>
    %78 = vector.extract_strided_slice %63 {offsets = [0, 4, 0], sizes = [1, 16, 36], strides = [1, 1, 1]} : vector<1x20x36xf32> to vector<1x16x36xf32>
    %79 = arith.addf %77, %78 : vector<1x16x36xf32>
    %cst_33 = arith.constant 4.000000e-02 : f32
    %80 = vector.broadcast %cst_33 : f32 to vector<1x16x36xf32>
    %81 = arith.mulf %79, %80 : vector<1x16x36xf32>
    %82 = vector.extract_strided_slice %64 {offsets = [0, 0, 0], sizes = [1, 16, 36], strides = [1, 1, 1]} : vector<1x20x36xf32> to vector<1x16x36xf32>
    %83 = vector.extract_strided_slice %64 {offsets = [0, 1, 0], sizes = [1, 16, 36], strides = [1, 1, 1]} : vector<1x20x36xf32> to vector<1x16x36xf32>
    %84 = arith.addf %82, %83 : vector<1x16x36xf32>
    %85 = vector.extract_strided_slice %64 {offsets = [0, 2, 0], sizes = [1, 16, 36], strides = [1, 1, 1]} : vector<1x20x36xf32> to vector<1x16x36xf32>
    %86 = arith.addf %84, %85 : vector<1x16x36xf32>
    %87 = vector.extract_strided_slice %64 {offsets = [0, 3, 0], sizes = [1, 16, 36], strides = [1, 1, 1]} : vector<1x20x36xf32> to vector<1x16x36xf32>
    %88 = arith.addf %86, %87 : vector<1x16x36xf32>
    %89 = vector.extract_strided_slice %64 {offsets = [0, 4, 0], sizes = [1, 16, 36], strides = [1, 1, 1]} : vector<1x20x36xf32> to vector<1x16x36xf32>
    %90 = arith.addf %88, %89 : vector<1x16x36xf32>
    %cst_34 = arith.constant 4.000000e-02 : f32
    %91 = vector.broadcast %cst_34 : f32 to vector<1x16x36xf32>
    %92 = arith.mulf %90, %91 : vector<1x16x36xf32>
    %93 = vector.extract_strided_slice %66 {offsets = [0, 0, 0], sizes = [1, 16, 36], strides = [1, 1, 1]} : vector<1x20x36xf32> to vector<1x16x36xf32>
    %94 = vector.extract_strided_slice %66 {offsets = [0, 1, 0], sizes = [1, 16, 36], strides = [1, 1, 1]} : vector<1x20x36xf32> to vector<1x16x36xf32>
    %95 = arith.addf %93, %94 : vector<1x16x36xf32>
    %96 = vector.extract_strided_slice %66 {offsets = [0, 2, 0], sizes = [1, 16, 36], strides = [1, 1, 1]} : vector<1x20x36xf32> to vector<1x16x36xf32>
    %97 = arith.addf %95, %96 : vector<1x16x36xf32>
    %98 = vector.extract_strided_slice %66 {offsets = [0, 3, 0], sizes = [1, 16, 36], strides = [1, 1, 1]} : vector<1x20x36xf32> to vector<1x16x36xf32>
    %99 = arith.addf %97, %98 : vector<1x16x36xf32>
    %100 = vector.extract_strided_slice %66 {offsets = [0, 4, 0], sizes = [1, 16, 36], strides = [1, 1, 1]} : vector<1x20x36xf32> to vector<1x16x36xf32>
    %101 = arith.addf %99, %100 : vector<1x16x36xf32>
    %cst_35 = arith.constant 4.000000e-02 : f32
    %102 = vector.broadcast %cst_35 : f32 to vector<1x16x36xf32>
    %103 = arith.mulf %101, %102 : vector<1x16x36xf32>
    %104 = arith.mulf %81, %81 : vector<1x16x36xf32>
    %105 = arith.subf %103, %104 : vector<1x16x36xf32>
    %106 = vector.extract_strided_slice %68 {offsets = [0, 0, 0], sizes = [1, 16, 36], strides = [1, 1, 1]} : vector<1x20x36xf32> to vector<1x16x36xf32>
    %107 = vector.extract_strided_slice %68 {offsets = [0, 1, 0], sizes = [1, 16, 36], strides = [1, 1, 1]} : vector<1x20x36xf32> to vector<1x16x36xf32>
    %108 = arith.addf %106, %107 : vector<1x16x36xf32>
    %109 = vector.extract_strided_slice %68 {offsets = [0, 2, 0], sizes = [1, 16, 36], strides = [1, 1, 1]} : vector<1x20x36xf32> to vector<1x16x36xf32>
    %110 = arith.addf %108, %109 : vector<1x16x36xf32>
    %111 = vector.extract_strided_slice %68 {offsets = [0, 3, 0], sizes = [1, 16, 36], strides = [1, 1, 1]} : vector<1x20x36xf32> to vector<1x16x36xf32>
    %112 = arith.addf %110, %111 : vector<1x16x36xf32>
    %113 = vector.extract_strided_slice %68 {offsets = [0, 4, 0], sizes = [1, 16, 36], strides = [1, 1, 1]} : vector<1x20x36xf32> to vector<1x16x36xf32>
    %114 = arith.addf %112, %113 : vector<1x16x36xf32>
    %cst_36 = arith.constant 4.000000e-02 : f32
    %115 = vector.broadcast %cst_36 : f32 to vector<1x16x36xf32>
    %116 = arith.mulf %114, %115 : vector<1x16x36xf32>
    %117 = arith.mulf %92, %92 : vector<1x16x36xf32>
    %118 = arith.subf %116, %117 : vector<1x16x36xf32>
    %119 = vector.extract_strided_slice %70 {offsets = [0, 0, 0], sizes = [1, 16, 36], strides = [1, 1, 1]} : vector<1x20x36xf32> to vector<1x16x36xf32>
    %120 = vector.extract_strided_slice %70 {offsets = [0, 1, 0], sizes = [1, 16, 36], strides = [1, 1, 1]} : vector<1x20x36xf32> to vector<1x16x36xf32>
    %121 = arith.addf %119, %120 : vector<1x16x36xf32>
    %122 = vector.extract_strided_slice %70 {offsets = [0, 2, 0], sizes = [1, 16, 36], strides = [1, 1, 1]} : vector<1x20x36xf32> to vector<1x16x36xf32>
    %123 = arith.addf %121, %122 : vector<1x16x36xf32>
    %124 = vector.extract_strided_slice %70 {offsets = [0, 3, 0], sizes = [1, 16, 36], strides = [1, 1, 1]} : vector<1x20x36xf32> to vector<1x16x36xf32>
    %125 = arith.addf %123, %124 : vector<1x16x36xf32>
    %126 = vector.extract_strided_slice %70 {offsets = [0, 4, 0], sizes = [1, 16, 36], strides = [1, 1, 1]} : vector<1x20x36xf32> to vector<1x16x36xf32>
    %127 = arith.addf %125, %126 : vector<1x16x36xf32>
    %cst_37 = arith.constant 4.000000e-02 : f32
    %128 = vector.broadcast %cst_37 : f32 to vector<1x16x36xf32>
    %129 = arith.mulf %127, %128 : vector<1x16x36xf32>
    %130 = arith.mulf %81, %92 : vector<1x16x36xf32>
    %131 = arith.subf %129, %130 : vector<1x16x36xf32>
    %cst_38 = arith.constant 2.000000e+00 : f32
    %132 = vector.broadcast %cst_38 : f32 to vector<1x16x36xf32>
    %133 = arith.mulf %132, %81 : vector<1x16x36xf32>
    %134 = arith.mulf %133, %92 : vector<1x16x36xf32>
    %cst_39 = arith.constant 9.99999974E-5 : f32
    %135 = vector.broadcast %cst_39 : f32 to vector<1x16x36xf32>
    %136 = arith.addf %134, %135 : vector<1x16x36xf32>
    %cst_40 = arith.constant 2.000000e+00 : f32
    %137 = vector.broadcast %cst_40 : f32 to vector<1x16x36xf32>
    %138 = arith.mulf %137, %131 : vector<1x16x36xf32>
    %cst_41 = arith.constant 8.99999984E-4 : f32
    %139 = vector.broadcast %cst_41 : f32 to vector<1x16x36xf32>
    %140 = arith.addf %138, %139 : vector<1x16x36xf32>
    %141 = arith.mulf %136, %140 : vector<1x16x36xf32>
    %142 = arith.mulf %81, %81 : vector<1x16x36xf32>
    %143 = arith.mulf %92, %92 : vector<1x16x36xf32>
    %144 = arith.addf %142, %143 : vector<1x16x36xf32>
    %cst_42 = arith.constant 9.99999974E-5 : f32
    %145 = vector.broadcast %cst_42 : f32 to vector<1x16x36xf32>
    %146 = arith.addf %144, %145 : vector<1x16x36xf32>
    %147 = arith.addf %105, %118 : vector<1x16x36xf32>
    %cst_43 = arith.constant 8.99999984E-4 : f32
    %148 = vector.broadcast %cst_43 : f32 to vector<1x16x36xf32>
    %149 = arith.addf %147, %148 : vector<1x16x36xf32>
    %150 = arith.mulf %146, %149 : vector<1x16x36xf32>
    %151 = tpu.reciprocal %150 {approx = true} : vector<1x16x36xf32> -> vector<1x16x36xf32>
    %152 = arith.mulf %150, %151 : vector<1x16x36xf32>
    %cst_44 = arith.constant 2.000000e+00 : f32
    %153 = vector.broadcast %cst_44 : f32 to vector<1x16x36xf32>
    %154 = arith.subf %153, %152 : vector<1x16x36xf32>
    %155 = arith.mulf %151, %154 : vector<1x16x36xf32>
    %156 = arith.mulf %141, %155 : vector<1x16x36xf32>
    %157 = tpu.iota {dimensions = array<i32: 2>} : vector<1x1x36xi32>
    %158 = tpu.iota {dimensions = array<i32: 0>} : vector<1x1x1xi32>
    %cst_45 = arith.constant 0.000000e+00 : f32
    %159 = vector.broadcast %cst_45 : f32 to vector<1x1x36xf32>
    %c0_i32 = arith.constant 0 : i32
    %160 = vector.broadcast %c0_i32 : i32 to vector<1x1x36xi32>
    %161 = arith.cmpi sge, %157, %160 : vector<1x1x36xi32>
    %c16_i32 = arith.constant 16 : i32
    %162 = vector.broadcast %c16_i32 : i32 to vector<1x1x36xi32>
    %163 = arith.cmpi slt, %157, %162 : vector<1x1x36xi32>
    %164 = arith.andi %161, %163 : vector<1x1x36xi1>
    %c2_i32 = arith.constant 2 : i32
    %165 = arith.muli %arg0, %c2_i32 : i32
    %c2_i32_46 = arith.constant 2 : i32
    %166 = vector.broadcast %c2_i32_46 : i32 to vector<1x1x1xi32>
    %167 = arith.muli %158, %166 : vector<1x1x1xi32>
    %168 = vector.broadcast %165 : i32 to vector<1x1x1xi32>
    %169 = arith.addi %168, %167 : vector<1x1x1xi32>
    %c0_i32_47 = arith.constant 0 : i32
    %170 = vector.broadcast %c0_i32_47 : i32 to vector<1x1x1xi32>
    %171 = arith.addi %169, %170 : vector<1x1x1xi32>
    %c2_i32_48 = arith.constant 2 : i32
    %172 = vector.broadcast %c2_i32_48 : i32 to vector<1x1x1xi32>
    %173 = arith.cmpi slt, %171, %172 : vector<1x1x1xi32>
    %174 = vector.broadcast %173 : vector<1x1x1xi1> to vector<1x1x36xi1>
    %175 = arith.andi %164, %174 : vector<1x1x36xi1>
    %cst_49 = arith.constant 1.000000e+00 : f32
    %cst_50 = arith.constant 0.000000e+00 : f32
    %176 = vector.broadcast %cst_49 : f32 to vector<1x1x36xf32>
    %177 = vector.broadcast %cst_50 : f32 to vector<1x1x36xf32>
    %178 = arith.select %175, %176, %177 : vector<1x1x36xi1>, vector<1x1x36xf32>
    %179 = arith.addf %159, %178 : vector<1x1x36xf32>
    %c20_i32 = arith.constant 20 : i32
    %180 = vector.broadcast %c20_i32 : i32 to vector<1x1x36xi32>
    %181 = arith.cmpi sge, %157, %180 : vector<1x1x36xi32>
    %c36_i32 = arith.constant 36 : i32
    %182 = vector.broadcast %c36_i32 : i32 to vector<1x1x36xi32>
    %183 = arith.cmpi slt, %157, %182 : vector<1x1x36xi32>
    %184 = arith.andi %181, %183 : vector<1x1x36xi1>
    %c2_i32_51 = arith.constant 2 : i32
    %185 = arith.muli %arg0, %c2_i32_51 : i32
    %c2_i32_52 = arith.constant 2 : i32
    %186 = vector.broadcast %c2_i32_52 : i32 to vector<1x1x1xi32>
    %187 = arith.muli %158, %186 : vector<1x1x1xi32>
    %188 = vector.broadcast %185 : i32 to vector<1x1x1xi32>
    %189 = arith.addi %188, %187 : vector<1x1x1xi32>
    %c1_i32 = arith.constant 1 : i32
    %190 = vector.broadcast %c1_i32 : i32 to vector<1x1x1xi32>
    %191 = arith.addi %189, %190 : vector<1x1x1xi32>
    %c2_i32_53 = arith.constant 2 : i32
    %192 = vector.broadcast %c2_i32_53 : i32 to vector<1x1x1xi32>
    %193 = arith.cmpi slt, %191, %192 : vector<1x1x1xi32>
    %194 = vector.broadcast %193 : vector<1x1x1xi1> to vector<1x1x36xi1>
    %195 = arith.andi %184, %194 : vector<1x1x36xi1>
    %cst_54 = arith.constant 1.000000e+00 : f32
    %cst_55 = arith.constant 0.000000e+00 : f32
    %196 = vector.broadcast %cst_54 : f32 to vector<1x1x36xf32>
    %197 = vector.broadcast %cst_55 : f32 to vector<1x1x36xf32>
    %198 = arith.select %195, %196, %197 : vector<1x1x36xi1>, vector<1x1x36xf32>
    %199 = arith.addf %179, %198 : vector<1x1x36xf32>
    %200 = vector.broadcast %199 : vector<1x1x36xf32> to vector<1x16x36xf32>
    %201 = arith.mulf %156, %200 : vector<1x16x36xf32>
    %202 = vector.shape_cast %201 : vector<1x16x36xf32> to vector<1x1x16x36xf32>
    %cst_56 = arith.constant dense<0.000000e+00> : vector<1xf32>
    %203 = vector.multi_reduction <add>, %202, %cst_56 [1, 2, 3] : vector<1x1x16x36xf32> to vector<1xf32>
    %204 = vector.shape_cast %203 : vector<1xf32> to vector<1x1x1x1xf32>
    %205 = vector.extract %204[0, 0, 0, 0] : f32 from vector<1x1x1x1xf32>
    %cst_57 = arith.constant 3.906250e-03 : f32
    %206 = arith.mulf %205, %cst_57 : f32
    %cst_58 = arith.constant 0.000000e+00 : f32
    %207 = vector.broadcast %cst_58 : f32 to vector<1x1x128xf32>
    %208 = vector.broadcast %206 : f32 to vector<1x1x128xf32>
    %209 = arith.addf %207, %208 : vector<1x1x128xf32>
    %c0_59 = arith.constant 0 : index
    %c0_60 = arith.constant 0 : index
    %c0_61 = arith.constant 0 : index
    %210 = vector.load %arg3[%c0_59, %c0_60, %c0_61] : memref<1x1x128xf32, #tpu.memory_space<vmem>>, vector<1x1x128xf32>
    tpu.vector_store %arg3[%c0_59, %c0_60, %c0_61], %209 {strides = array<i32>} : memref<1x1x128xf32, #tpu.memory_space<vmem>>, vector<1x1x128xf32>,
    return
  }
  func.func @transform_0(%arg0: i32) -> (i32, i32, i32) {
    %c0_i32 = arith.constant 0 : i32
    %c0_i32_0 = arith.constant 0 : i32
    %c0_i32_1 = arith.constant 0 : i32
    return %arg0, %c0_i32, %c0_i32_0 : i32, i32, i32
  }
  func.func @transform_1(%arg0: i32) -> (i32, i32, i32) {
    %c0_i32 = arith.constant 0 : i32
    %c0_i32_0 = arith.constant 0 : i32
    %c0_i32_1 = arith.constant 0 : i32
    return %arg0, %c0_i32, %c0_i32_0 : i32, i32, i32
  }
  func.func @transform_2(%arg0: i32) -> (i32, i32, i32) {
    %c0_i32 = arith.constant 0 : i32
    %c0_i32_0 = arith.constant 0 : i32
    %c0_i32_1 = arith.constant 0 : i32
    return %arg0, %c0_i32, %c0_i32_0 : i32, i32, i32
  }
}

</mosaic_0001>

<bundles_post_ra>
// kernel: tpu_custom_call.1
= control target key start
LH: loop header
LB: loop body
LE: loop exit
PB: predicated region body
PF: predicated region fallthrough
CT: control target
= control target key end

     0   :  { %7 = vsyncpa [#allocation5], 0  ;;  %s1099_s0 = inlined_call_operand.hbm [shape: f32[2,16,16], index: 0, kind: input, shape index: {}]   ;;  %s1100_s1 = inlined_call_operand.hbm [shape: f32[2,16,16], index: 1, kind: input, shape index: {}]   ;;  %s1101_s2 = inlined_call_operand.hbm [shape: f32[1,1,128], index: 2, kind: output, shape index: {}]  }
   0x1   :  { %8 = vsyncpa [#allocation8], 0 }
   0x2   :  { %9 = vsyncpa [#allocation6], 0  ;;  %s771_s9 = smov [#allocation4]   ;;  %s699_s13 = scalar_lea.hbm %s1099_s0, 512 }
   0x3   :  { %s15_s10 = sshll.u32 %s771_s9, 4  ;;  %p700_p0 = scmp.ne.s32.totalorder %s1099_s0, %s699_s13  ;;  %s16_s10 = int_to_ptr.vmem [resolvable:$true] %s15_s10 }
   0x4   :  { %p703_p1 = scmp.lt.u32.totalorder %s699_s13, %s1099_s0 }
   0x6   :  { %p705_p2 = pnand %p703_p1, %p700_p0 }
   0x8   :  { %708 = shalt.err (!%p705_p2)
}
   0x9   :  { %s709_s18 = scalar_lea.vmem %s16_s10, 512  ;;  %p714_p4 = scmp.lt.s32.totalorder %s16_s10, %s16_s10 }
   0xa   :  { %p710_p3 = scmp.ne.s32.totalorder %s16_s10, %s709_s18  ;;  %p715_p5 = scmp.lt.s32.totalorder %s709_s18, %s709_s18 }
   0xc   :  { %p716_p6 = por %p715_p5, %p714_p4 }
   0xe   :  { %p717_p7 = pnand %p716_p6, %p710_p3 }
  0x10   :  { %720 = shalt.err (!%p717_p7)
}
  0x11   :  { %s772_s19 = smov 128   ;;  %s773_s20 = smov 8  }
  0x12   :  { %21 = dma.hbm_to_vmem [thread:$0]  %s1099_s0, 512, %s16_s10, [#allocation5], %s772_s19, %s772_s19, %s773_s20  }
  0x13   :  { %s774_s23 = smov [#allocation7]   ;;  %s721_s27 = scalar_lea.hbm %s1100_s1, 512 }
  0x14   :  { %s27_s24 = sshll.u32 %s774_s23, 4  ;;  %p722_p8 = scmp.ne.s32.totalorder %s1100_s1, %s721_s27  ;;  %s28_s24 = int_to_ptr.vmem [resolvable:$true] %s27_s24 }
  0x15   :  { %p725_p9 = scmp.lt.u32.totalorder %s721_s27, %s1100_s1 }
  0x17   :  { %p727_p10 = pnand %p725_p9, %p722_p8 }
  0x19   :  { %730 = shalt.err (!%p727_p10)
}
  0x1a   :  { %s731_s4 = scalar_lea.vmem %s28_s24, 512  ;;  %p736_p12 = scmp.lt.s32.totalorder %s28_s24, %s28_s24 }
  0x1b   :  { %p732_p11 = scmp.ne.s32.totalorder %s28_s24, %s731_s4  ;;  %p737_p13 = scmp.lt.s32.totalorder %s731_s4, %s731_s4 }
  0x1d   :  { %p738_p0 = por %p737_p13, %p736_p12 }
  0x1f   :  { %p739_p1 = pnand %p738_p0, %p732_p11 }
  0x21   :  { %742 = shalt.err (!%p739_p1)
}
  0x22   :  { %33 = dma.hbm_to_vmem [thread:$0]  %s1100_s1, 512, %s28_s24, [#allocation8], %s772_s19, %s772_s19, %s773_s20  }
  0x23   :  { %765 = dma.done.wait [#allocation5], 512  }
  0x24   :  { %766 = vsyncadd [#allocation5], 4294966784 }
  0x25   :  { %767 = dma.done.wait [#allocation8], 512  }
  0x26   :  { %768 = vsyncadd [#allocation8], 4294966784  ;;  %vm40_vm0 = vcmask 326656   ;;  %v775_v0 = vmov 0.0   ;;  %vm43_vm1 = vcmask 322560   ;;  %v61_v1 = vld [vmem:[#allocation7] sm:$0xff] }
  0x27   :  { %45 = vst.msk [vmem:[#allocation3] sm:$0xff] %vm40_vm0, %v775_v0  ;;  %46 = vst.msk [vmem:[#allocation3 + $0x8] sm:$0xff] %vm40_vm0, %v775_v0  ;;  %v48_v2 = vld [vmem:[#allocation4] sm:$0xff]  ;;  %s776_s1 = smov 2   ;;  %v62_v3 = vld [vmem:[#allocation7 + $0x8] sm:$0xff]  ;;  %s777_s6 = smov 22  }
  0x28   :  { %41 = vst.msk [vmem:[#allocation2] sm:$0xff] %vm40_vm0, %v775_v0  ;;  %42 = vst.msk [vmem:[#allocation2 + $0x8] sm:$0xff] %vm40_vm0, %v775_v0  ;;  %65 = vrot.lane.b32.xlu1 %v61_v1, %s776_s1  ;;  %52 = vrot.lane.b32.xlu0 %v48_v2, %s776_s1  ;;  %v49_v4 = vld [vmem:[#allocation4 + $0x8] sm:$0xff]  ;;  %v75_v5 = vld [vmem:[#allocation4 + $0x18] sm:$0xff]  ;;  %vm58_vm2 = vcmask 146448   ;;  %vm84_vm3 = vcmask 310448  }
  0x29   :  { %47 = vst.msk [vmem:[#allocation3 + $0x10] sm:$0xf] %vm43_vm1, %v775_v0  ;;  %44 = vst.msk [vmem:[#allocation2 + $0x10] sm:$0xf] %vm43_vm1, %v775_v0  ;;  %v74_v6 = vld [vmem:[#allocation4 + $0x10] sm:$0xff]  ;;  %v89_v7 = vld [vmem:[#allocation7 + $0x18] sm:$0xff] }
  0x2a   :  { %v88_v8 = vld [vmem:[#allocation7 + $0x10] sm:$0xff]  ;;  %s778_s7 = smov 127   ;;  %s779_s8 = smov 126   ;;  %vm373_vm4 = vcmask 1046528   ;;  %vm383_vm5 = vcmask 1045504   ;;  %vm393_vm6 = vcmask 1044480  }
  0x2b   :  { %s780_s9 = smov 125   ;;  %s781_s10 = smov 124   ;;  %vm403_vm7 = vcmask 1043456   ;;  %vm648_vm12 = vcmask 293888  }
  0x2c   :  { %67 = vrot.lane.b32.xlu1 %v62_v3, %s776_s1  ;;  %54 = vrot.lane.b32.xlu0 %v49_v4, %s776_s1  ;;  %s782_s11 = smov [#allocation9]  }
  0x2d   :  { %s671_s12 = sshll.u32 %s782_s11, 4  ;;  %s672_s12 = int_to_ptr.vmem [resolvable:$true] %s671_s12 }
  0x2e   :  { %s743_s15 = scalar_lea.vmem %s672_s12, 16  ;;  %s747_s16 = scalar_lea.vmem %s672_s12, 32 }
  0x2f   :  { %p744_p2 = scmp.ne.s32.totalorder %s672_s12, %s743_s15  ;;  %p748_p3 = scmp.lt.s32.totalorder %s672_s12, %s672_s12 }
  0x30   :  { %80 = vrot.lane.b32.xlu1 %v75_v5, %s777_s6  ;;  %78 = vrot.lane.b32.xlu0 %v74_v6, %s777_s6  ;;  %p749_p4 = scmp.lt.s32.totalorder %s747_s16, %s743_s15 }
  0x32   :  { %p750_p5 = por %p749_p4, %p748_p3 }
  0x34   :  { %94 = vrot.lane.b32.xlu1 %v89_v7, %s777_s6  ;;  %92 = vrot.lane.b32.xlu0 %v88_v8, %s777_s6  ;;  %p751_p6 = pnand %p750_p5, %p744_p2 }
  0x9a   :  { %v66_v9 = vpop.permute.xlu1 %65  ;;  %v53_v10 = vpop.permute.xlu0 %52 }
  0x9b   :  { %71 = vst.msk [vmem:[#allocation3 + $0x2] sm:$0xff] %vm58_vm2, %v66_v9  ;;  %59 = vst.msk [vmem:[#allocation2 + $0x2] sm:$0xff] %vm58_vm2, %v53_v10 }
  0x9e   :  { %v68_v11 = vpop.permute.xlu1 %67  ;;  %v55_v12 = vpop.permute.xlu0 %54 }
  0x9f   :  { %72 = vst.msk [vmem:[#allocation3 + $0xa] sm:$0xff] %vm58_vm2, %v68_v11  ;;  %60 = vst.msk [vmem:[#allocation2 + $0xa] sm:$0xff] %vm58_vm2, %v55_v12 }
  0xa2   :  { %v81_v13 = vpop.permute.xlu1 %80  ;;  %v79_v14 = vpop.permute.xlu0 %78 }
  0xa3   :  { %86 = vst.msk [vmem:[#allocation2 + $0xa] sm:$0xff] %vm84_vm3, %v81_v13  ;;  %85 = vst.msk [vmem:[#allocation2 + $0x2] sm:$0xff] %vm84_vm3, %v79_v14 }
  0xa6   :  { %v95_v15 = vpop.permute.xlu1 %94  ;;  %v93_v16 = vpop.permute.xlu0 %92 }
  0xa7   :  { %99 = vst.msk [vmem:[#allocation3 + $0xa] sm:$0xff] %vm84_vm3, %v95_v15  ;;  %98 = vst.msk [vmem:[#allocation3 + $0x2] sm:$0xff] %vm84_vm3, %v93_v16 }
  0xaa   :  { %v828_v17 = vld [vmem:[#allocation2 + $0x8] sm:$0xff]  ;;  %v830_v18 = vld [vmem:[#allocation2] sm:$0xff]  ;;  %v838_v20 = vld [vmem:[#allocation2 + $0x10] sm:$0xf] }
  0xab   :  { %120 = vrot.lane.b32.xlu1 %v828_v17, %s778_s7  ;;  %118 = vrot.lane.b32.xlu0 %v830_v18, %s778_s7  ;;  %v890_v23 = vmul.f32 %v828_v17, %v828_v17  ;;  %v894_v24 = vmul.f32 %v830_v18, %v830_v18  ;;  %v906_v26 = vmul.f32 %v838_v20, %v838_v20 }
  0xae   :  { %v836_v19 = vld [vmem:[#allocation3] sm:$0xff]  ;;  %v844_v21 = vld [vmem:[#allocation3 + $0x10] sm:$0xf]  ;;  %v846_v22 = vld [vmem:[#allocation3 + $0x8] sm:$0xff] }
  0xaf   :  { %133 = vrot.lane.b32.xlu1 %v836_v19, %s778_s7  ;;  %122 = vrot.lane.b32.xlu0 %v838_v20, %s778_s7  ;;  %v902_v25 = vmul.f32 %v836_v19, %v836_v19  ;;  %v914_v27 = vmul.f32 %v844_v21, %v844_v21  ;;  %v918_v28 = vmul.f32 %v846_v22, %v846_v22 }
  0xb0   :  { %v962_v29 = vmul.f32 %v846_v22, %v828_v17  ;;  %v966_v30 = vmul.f32 %v836_v19, %v830_v18  ;;  %v974_v31 = vmul.f32 %v844_v21, %v838_v20 }
  0xb3   :  { %137 = vrot.lane.b32.xlu1 %v844_v21, %s778_s7  ;;  %135 = vrot.lane.b32.xlu0 %v846_v22, %s778_s7 }
  0xb7   :  { %192 = vrot.lane.b32.xlu1 %v828_v17, %s779_s8  ;;  %190 = vrot.lane.b32.xlu0 %v830_v18, %s779_s8 }
  0xbb   :  { %202 = vrot.lane.b32.xlu1 %v836_v19, %s779_s8  ;;  %194 = vrot.lane.b32.xlu0 %v838_v20, %s779_s8 }
  0xbf   :  { %206 = vrot.lane.b32.xlu1 %v844_v21, %s779_s8  ;;  %204 = vrot.lane.b32.xlu0 %v846_v22, %s779_s8 }
  0xc3   :  { %252 = vrot.lane.b32.xlu1 %v828_v17, %s780_s9  ;;  %250 = vrot.lane.b32.xlu0 %v830_v18, %s780_s9 }
  0xc7   :  { %262 = vrot.lane.b32.xlu1 %v836_v19, %s780_s9  ;;  %254 = vrot.lane.b32.xlu0 %v838_v20, %s780_s9 }
  0xcb   :  { %266 = vrot.lane.b32.xlu1 %v844_v21, %s780_s9  ;;  %264 = vrot.lane.b32.xlu0 %v846_v22, %s780_s9 }
  0xcf   :  { %312 = vrot.lane.b32.xlu1 %v828_v17, %s781_s10  ;;  %310 = vrot.lane.b32.xlu0 %v830_v18, %s781_s10 }
  0xd3   :  { %322 = vrot.lane.b32.xlu1 %v836_v19, %s781_s10  ;;  %314 = vrot.lane.b32.xlu0 %v838_v20, %s781_s10 }
  0xd7   :  { %326 = vrot.lane.b32.xlu1 %v844_v21, %s781_s10  ;;  %324 = vrot.lane.b32.xlu0 %v846_v22, %s781_s10 }
  0xdb   :  { %150 = vrot.lane.b32.xlu1 %v890_v23, %s778_s7  ;;  %148 = vrot.lane.b32.xlu0 %v894_v24, %s778_s7 }
  0xdf   :  { %163 = vrot.lane.b32.xlu1 %v902_v25, %s778_s7  ;;  %152 = vrot.lane.b32.xlu0 %v906_v26, %s778_s7 }
  0xe3   :  { %167 = vrot.lane.b32.xlu1 %v914_v27, %s778_s7  ;;  %165 = vrot.lane.b32.xlu0 %v918_v28, %s778_s7 }
  0xe7   :  { %216 = vrot.lane.b32.xlu1 %v890_v23, %s779_s8  ;;  %214 = vrot.lane.b32.xlu0 %v894_v24, %s779_s8 }
  0xeb   :  { %226 = vrot.lane.b32.xlu1 %v902_v25, %s779_s8  ;;  %218 = vrot.lane.b32.xlu0 %v906_v26, %s779_s8 }
  0xef   :  { %230 = vrot.lane.b32.xlu1 %v914_v27, %s779_s8  ;;  %228 = vrot.lane.b32.xlu0 %v918_v28, %s779_s8 }
  0xf3   :  { %276 = vrot.lane.b32.xlu1 %v890_v23, %s780_s9  ;;  %274 = vrot.lane.b32.xlu0 %v894_v24, %s780_s9 }
  0xf7   :  { %286 = vrot.lane.b32.xlu1 %v902_v25, %s780_s9  ;;  %278 = vrot.lane.b32.xlu0 %v906_v26, %s780_s9 }
  0xfb   :  { %290 = vrot.lane.b32.xlu1 %v914_v27, %s780_s9  ;;  %288 = vrot.lane.b32.xlu0 %v918_v28, %s780_s9 }
  0xff   :  { %336 = vrot.lane.b32.xlu1 %v890_v23, %s781_s10  ;;  %334 = vrot.lane.b32.xlu0 %v894_v24, %s781_s10 }
 0x103   :  { %346 = vrot.lane.b32.xlu1 %v902_v25, %s781_s10  ;;  %338 = vrot.lane.b32.xlu0 %v906_v26, %s781_s10 }
 0x107   :  { %350 = vrot.lane.b32.xlu1 %v914_v27, %s781_s10  ;;  %348 = vrot.lane.b32.xlu0 %v918_v28, %s781_s10 }
 0x10b   :  { %180 = vrot.lane.b32.xlu1 %v962_v29, %s778_s7  ;;  %178 = vrot.lane.b32.xlu0 %v966_v30, %s778_s7 }
 0x10f   :  { %238 = vrot.lane.b32.xlu1 %v966_v30, %s779_s8  ;;  %182 = vrot.lane.b32.xlu0 %v974_v31, %s778_s7 }
 0x113   :  { %242 = vrot.lane.b32.xlu1 %v974_v31, %s779_s8  ;;  %240 = vrot.lane.b32.xlu0 %v962_v29, %s779_s8 }
 0x117   :  { %300 = vrot.lane.b32.xlu1 %v962_v29, %s780_s9  ;;  %298 = vrot.lane.b32.xlu0 %v966_v30, %s780_s9 }
 0x11b   :  { %358 = vrot.lane.b32.xlu1 %v966_v30, %s781_s10  ;;  %302 = vrot.lane.b32.xlu0 %v974_v31, %s780_s9 }
 0x11d   :  { %v121_v32 = vpop.permute.xlu1 %120  ;;  %v119_v33 = vpop.permute.xlu0 %118 }
 0x11e   :  { %v128_v38 = vadd.f32 %v121_v32, %v828_v17  ;;  %v127_v39 = vadd.f32 %v119_v33, %v830_v18 }
 0x11f   :  { %362 = vrot.lane.b32.xlu1 %v974_v31, %s781_s10  ;;  %360 = vrot.lane.b32.xlu0 %v962_v29, %s781_s10 }
 0x121   :  { %v134_v34 = vpop.permute.xlu1 %133  ;;  %v123_v35 = vpop.permute.xlu0 %122 }
 0x122   :  { %v142_v44 = vadd.f32 %v134_v34, %v836_v19  ;;  %v129_v45 = vadd.f32 %v123_v35, %v838_v20 }
 0x125   :  { %v138_v36 = vpop.permute.xlu1 %137  ;;  %v136_v37 = vpop.permute.xlu0 %135 }
 0x126   :  { %v144_v50 = vadd.f32 %v138_v36, %v844_v21  ;;  %v143_v51 = vadd.f32 %v136_v37, %v846_v22 }
 0x129   :  { %v193_v40 = vpop.permute.xlu1 %192  ;;  %v191_v41 = vpop.permute.xlu0 %190 }
 0x12a   :  { %v200_v42 = vadd.f32 %v193_v40, %v128_v38  ;;  %v199_v43 = vadd.f32 %v191_v41, %v127_v39 }
 0x12d   :  { %v203_v46 = vpop.permute.xlu1 %202  ;;  %v195_v47 = vpop.permute.xlu0 %194 }
 0x12e   :  { %v211_v48 = vadd.f32 %v203_v46, %v142_v44  ;;  %v201_v49 = vadd.f32 %v195_v47, %v129_v45 }
 0x131   :  { %v207_v52 = vpop.permute.xlu1 %206  ;;  %v205_v53 = vpop.permute.xlu0 %204 }
 0x132   :  { %v213_v54 = vadd.f32 %v207_v52, %v144_v50  ;;  %v212_v55 = vadd.f32 %v205_v53, %v143_v51 }
 0x135   :  { %v253_v56 = vpop.permute.xlu1 %252  ;;  %v251_v57 = vpop.permute.xlu0 %250 }
 0x136   :  { %v260_v58 = vadd.f32 %v253_v56, %v200_v42  ;;  %v259_v59 = vadd.f32 %v251_v57, %v199_v43 }
 0x139   :  { %v263_v60 = vpop.permute.xlu1 %262  ;;  %v255_v61 = vpop.permute.xlu0 %254 }
 0x13a   :  { %v271_v62 = vadd.f32 %v263_v60, %v211_v48  ;;  %v261_v63 = vadd.f32 %v255_v61, %v201_v49 }
 0x13d   :  { %v267_v1 = vpop.permute.xlu1 %266  ;;  %v265_v2 = vpop.permute.xlu0 %264 }
 0x13e   :  { %v273_v32 = vadd.f32 %v267_v1, %v213_v54  ;;  %v272_v33 = vadd.f32 %v265_v2, %v212_v55 }
 0x141   :  { %v313_v3 = vpop.permute.xlu1 %312  ;;  %v311_v4 = vpop.permute.xlu0 %310 }
 0x142   :  { %v320_v5 = vadd.f32 %v313_v3, %v260_v58  ;;  %v319_v6 = vadd.f32 %v311_v4, %v259_v59 }
 0x144   :  { %v375_v7 = vrot.slane %v320_v5, 1  ;;  %v385_v8 = vrot.slane %v320_v5, 2  ;;  %v395_v9 = vrot.slane %v320_v5, 3  ;;  %v405_v10 = vrot.slane %v320_v5, 4 }
 0x145   :  { %v374_v11 = vrot.slane %v319_v6, 1  ;;  %v384_v12 = vrot.slane %v319_v6, 2  ;;  %v394_v13 = vrot.slane %v319_v6, 3  ;;  %v404_v14 = vrot.slane %v319_v6, 4  ;;  %v323_v15 = vpop.permute.xlu1 %322  ;;  %v315_v16 = vpop.permute.xlu0 %314 }
 0x146   :  { %v331_v17 = vadd.f32 %v323_v15, %v271_v62  ;;  %v321_v18 = vadd.f32 %v315_v16, %v261_v63 }
 0x147   :  { %v376_v19 = vsel %vm373_vm4, %v374_v11, %v375_v7  ;;  %v386_v20 = vsel %vm383_vm5, %v384_v12, %v385_v8  ;;  %v396_v21 = vsel %vm393_vm6, %v394_v13, %v395_v9  ;;  %v406_v22 = vsel %vm403_vm7, %v404_v14, %v405_v10 }
 0x148   :  { %v381_v34 = vadd.f32 %v376_v19, %v319_v6  ;;  %v418_v35 = vrot.slane %v331_v17, 1  ;;  %v377_v36 = vrot.slane %v321_v18, 1  ;;  %v387_v37 = vrot.slane %v321_v18, 2 }
 0x149   :  { %v397_v38 = vrot.slane %v321_v18, 3  ;;  %v327_v39 = vpop.permute.xlu1 %326  ;;  %v325_v40 = vpop.permute.xlu0 %324  ;;  %v407_v42 = vrot.slane %v321_v18, 4  ;;  %v427_v45 = vrot.slane %v331_v17, 2  ;;  %v436_v53 = vrot.slane %v331_v17, 3 }
 0x14a   :  { %v391_v41 = vadd.f32 %v386_v20, %v381_v34  ;;  %v333_v43 = vadd.f32 %v327_v39, %v273_v32  ;;  %v332_v44 = vadd.f32 %v325_v40, %v272_v33  ;;  %v378_v46 = vsel %vm373_vm4, %v375_v7, %v377_v36 }
 0x14b   :  { %v388_v47 = vsel %vm383_vm5, %v385_v8, %v387_v37  ;;  %v398_v48 = vsel %vm393_vm6, %v395_v9, %v397_v38  ;;  %v382_v50 = vadd.f32 %v378_v46, %v320_v5  ;;  %v408_v51 = vsel %vm403_vm7, %v405_v10, %v407_v42 }
 0x14c   :  { %v401_v49 = vadd.f32 %v396_v21, %v391_v41  ;;  %v421_v52 = vrot.slane %v333_v43, 1  ;;  %v430_v54 = vrot.slane %v333_v43, 2  ;;  %v439_v55 = vrot.slane %v333_v43, 3 }
 0x14d   :  { %v419_v56 = vrot.slane %v332_v44, 1  ;;  %v151_v57 = vpop.permute.xlu1 %150  ;;  %v149_v58 = vpop.permute.xlu0 %148  ;;  %v445_v59 = vrot.slane %v331_v17, 4  ;;  %v392_v60 = vadd.f32 %v388_v47, %v382_v50  ;;  %v428_v61 = vrot.slane %v332_v44, 2 }
 0x14e   :  { %v437_v62 = vrot.slane %v332_v44, 3  ;;  %v448_v63 = vrot.slane %v333_v43, 4  ;;  %v446_v3 = vrot.slane %v332_v44, 4  ;;  %v411_v13 = vadd.f32 %v406_v22, %v401_v49 }
 0x14f   :  { %v420_v1 = vsel %vm373_vm4, %v418_v35, %v419_v56  ;;  %v422_v2 = vsel %vm373_vm4, %v419_v56, %v421_v52  ;;  %v402_v4 = vadd.f32 %v398_v48, %v392_v60  ;;  %v429_v7 = vsel %vm383_vm5, %v427_v45, %v428_v61 }
 0x150   :  { %v425_v5 = vadd.f32 %v420_v1, %v331_v17  ;;  %v426_v6 = vadd.f32 %v422_v2, %v332_v44  ;;  %v431_v8 = vsel %vm383_vm5, %v428_v61, %v430_v54  ;;  %v438_v9 = vsel %vm393_vm6, %v436_v53, %v437_v62 }
 0x151   :  { %v440_v10 = vsel %vm393_vm6, %v437_v62, %v439_v55  ;;  %v164_v11 = vpop.permute.xlu1 %163  ;;  %v153_v12 = vpop.permute.xlu0 %152  ;;  %v412_v14 = vadd.f32 %v408_v51, %v402_v4  ;;  %v447_v18 = vsel %vm403_vm7, %v445_v59, %v446_v3  ;;  %v449_v19 = vsel %vm403_vm7, %v446_v3, %v448_v63 }
 0x152   :  { %v434_v15 = vadd.f32 %v429_v7, %v425_v5  ;;  %v435_v16 = vadd.f32 %v431_v8, %v426_v6  ;;  %v413_v34 = vmul.f32 0.04, %v411_v13  ;;  %v158_v62 = vadd.f32 %v151_v57, %v890_v23 }
 0x153   :  { %v414_v21 = vmul.f32 0.04, %v412_v14  ;;  %v157_v63 = vadd.f32 %v149_v58, %v894_v24  ;;  %v159_v5 = vadd.f32 %v153_v12, %v906_v26  ;;  %v172_v8 = vadd.f32 %v164_v11, %v902_v25 }
 0x154   :  { %v444_v17 = vadd.f32 %v440_v10, %v435_v16  ;;  %v443_v20 = vadd.f32 %v438_v9, %v434_v15  ;;  %v591_v22 = vmul.f32 2.0, %v413_v34  ;;  %v1020_v43 = vmul.f32 %v413_v34, %v413_v34 }
 0x155   :  { %v168_v32 = vpop.permute.xlu1 %167  ;;  %v166_v33 = vpop.permute.xlu0 %165  ;;  %v592_v41 = vmul.f32 2.0, %v414_v21  ;;  %v1018_v42 = vmul.f32 %v414_v21, %v414_v21 }
 0x156   :  { %v452_v35 = vadd.f32 %v447_v18, %v443_v20  ;;  %v453_v36 = vadd.f32 %v449_v19, %v444_v17  ;;  %v174_v13 = vadd.f32 %v168_v32, %v914_v27  ;;  %v173_v24 = vadd.f32 %v166_v33, %v918_v28 }
 0x158   :  { %v454_v37 = vmul.f32 0.04, %v452_v35  ;;  %v455_v40 = vmul.f32 0.04, %v453_v36 }
 0x159   :  { %v217_v38 = vpop.permute.xlu1 %216  ;;  %v215_v39 = vpop.permute.xlu0 %214 }
 0x15a   :  { %v1022_v44 = vmul.f32 %v454_v37, %v454_v37  ;;  %v1024_v45 = vmul.f32 %v454_v37, %v413_v34  ;;  %v1026_v46 = vmul.f32 %v455_v40, %v455_v40  ;;  %v1028_v47 = vmul.f32 %v455_v40, %v414_v21 }
 0x15b   :  { %v1030_v48 = vmul.f32 %v591_v22, %v454_v37  ;;  %v1032_v49 = vmul.f32 %v592_v41, %v455_v40  ;;  %v224_v3 = vadd.f32 %v217_v38, %v158_v62  ;;  %v223_v4 = vadd.f32 %v215_v39, %v157_v63 }
 0x15c   :  { %v1036_v50 = vadd.f32 %v1022_v44, %v1020_v43  ;;  %v1040_v53 = vadd.f32 %v1026_v46, %v1018_v42 }
 0x15d   :  { %v227_v51 = vpop.permute.xlu1 %226  ;;  %v219_v52 = vpop.permute.xlu0 %218 }
 0x15e   :  { %v225_v14 = vadd.f32 %v219_v52, %v159_v5  ;;  %v235_v23 = vadd.f32 %v227_v51, %v172_v8 }
 0x161   :  { %v231_v54 = vpop.permute.xlu1 %230  ;;  %v229_v55 = vpop.permute.xlu0 %228 }
 0x162   :  { %v237_v57 = vadd.f32 %v231_v54, %v174_v13  ;;  %v236_v25 = vadd.f32 %v229_v55, %v173_v24 }
 0x165   :  { %v277_v56 = vpop.permute.xlu1 %276  ;;  %v275_v59 = vpop.permute.xlu0 %274 }
 0x166   :  { %v284_v6 = vadd.f32 %v277_v56, %v224_v3  ;;  %v283_v7 = vadd.f32 %v275_v59, %v223_v4 }
 0x169   :  { %v287_v60 = vpop.permute.xlu1 %286  ;;  %v279_v61 = vpop.permute.xlu0 %278 }
 0x16a   :  { %v285_v58 = vadd.f32 %v279_v61, %v225_v14  ;;  %v295_v19 = vadd.f32 %v287_v60, %v235_v23 }
 0x16d   :  { %v291_v1 = vpop.permute.xlu1 %290  ;;  %v289_v2 = vpop.permute.xlu0 %288 }
 0x16e   :  { %v297_v38 = vadd.f32 %v291_v1, %v237_v57  ;;  %v296_v28 = vadd.f32 %v289_v2, %v236_v25 }
 0x171   :  { %v337_v9 = vpop.permute.xlu1 %336  ;;  %v335_v10 = vpop.permute.xlu0 %334 }
 0x172   :  { %v344_v15 = vadd.f32 %v337_v9, %v284_v6  ;;  %v343_v16 = vadd.f32 %v335_v10, %v283_v7 }
 0x174   :  { %v460_v18 = vrot.slane %v344_v15, 1  ;;  %v469_v17 = vrot.slane %v344_v15, 2  ;;  %v459_v26 = vrot.slane %v343_v16, 1  ;;  %v468_v12 = vrot.slane %v343_v16, 2 }
 0x175   :  { %v347_v20 = vpop.permute.xlu1 %346  ;;  %v339_v21 = vpop.permute.xlu0 %338  ;;  %v478_v11 = vrot.slane %v344_v15, 3  ;;  %v487_v34 = vrot.slane %v344_v15, 4  ;;  %v477_v32 = vrot.slane %v343_v16, 3  ;;  %v486_v36 = vrot.slane %v343_v16, 4 }
 0x176   :  { %v345_v35 = vadd.f32 %v339_v21, %v285_v58  ;;  %v461_v27 = vsel %vm373_vm4, %v459_v26, %v460_v18  ;;  %v355_v37 = vadd.f32 %v347_v20, %v295_v19  ;;  %v470_v39 = vsel %vm383_vm5, %v468_v12, %v469_v17 }
 0x177   :  { %v466_v33 = vadd.f32 %v461_v27, %v343_v16  ;;  %v479_v59 = vsel %vm393_vm6, %v477_v32, %v478_v11  ;;  %v488_v60 = vsel %vm403_vm7, %v486_v36, %v487_v34 }
 0x178   :  { %v462_v40 = vrot.slane %v345_v35, 1  ;;  %v471_v22 = vrot.slane %v345_v35, 2  ;;  %v480_v54 = vrot.slane %v345_v35, 3  ;;  %v504_v61 = vrot.slane %v355_v37, 1 }
 0x179   :  { %v351_v41 = vpop.permute.xlu1 %350  ;;  %v349_v51 = vpop.permute.xlu0 %348  ;;  %v475_v52 = vadd.f32 %v470_v39, %v466_v33  ;;  %v513_v63 = vrot.slane %v355_v37, 2  ;;  %v489_v2 = vrot.slane %v345_v35, 4  ;;  %v522_v4 = vrot.slane %v355_v37, 3 }
 0x17a   :  { %v357_v55 = vadd.f32 %v351_v41, %v297_v38  ;;  %v356_v56 = vadd.f32 %v349_v51, %v296_v28  ;;  %v463_v62 = vsel %vm373_vm4, %v460_v18, %v462_v40  ;;  %v472_v5 = vsel %vm383_vm5, %v469_v17, %v471_v22 }
 0x17b   :  { %v467_v1 = vadd.f32 %v463_v62, %v344_v15  ;;  %v484_v10 = vadd.f32 %v479_v59, %v475_v52  ;;  %v481_v14 = vsel %vm393_vm6, %v478_v11, %v480_v54  ;;  %v490_v18 = vsel %vm403_vm7, %v487_v34, %v489_v2 }
 0x17c   :  { %v507_v3 = vrot.slane %v357_v55, 1  ;;  %v516_v6 = vrot.slane %v357_v55, 2  ;;  %v505_v7 = vrot.slane %v356_v56, 1  ;;  %v514_v16 = vrot.slane %v356_v56, 2 }
 0x17d   :  { %v181_v8 = vpop.permute.xlu1 %180  ;;  %v179_v9 = vpop.permute.xlu0 %178  ;;  %v476_v13 = vadd.f32 %v472_v5, %v467_v1  ;;  %v525_v23 = vrot.slane %v357_v55, 3  ;;  %v523_v15 = vrot.slane %v356_v56, 3  ;;  %v534_v26 = vrot.slane %v357_v55, 4 }
 0x17e   :  { %v506_v24 = vsel %vm373_vm4, %v504_v61, %v505_v7  ;;  %v508_v57 = vsel %vm373_vm4, %v505_v7, %v507_v3  ;;  %v515_v12 = vsel %vm383_vm5, %v513_v63, %v514_v16  ;;  %v517_v20 = vsel %vm383_vm5, %v514_v16, %v516_v6 }
 0x17f   :  { %v485_v58 = vadd.f32 %v481_v14, %v476_v13  ;;  %v511_v19 = vadd.f32 %v506_v24, %v355_v37  ;;  %v512_v17 = vadd.f32 %v508_v57, %v356_v56  ;;  %v532_v21 = vrot.slane %v356_v56, 4 }
 0x180   :  { %v493_v35 = vadd.f32 %v488_v60, %v484_v10  ;;  %v531_v38 = vrot.slane %v355_v37, 4  ;;  %v524_v28 = vsel %vm393_vm6, %v522_v4, %v523_v15  ;;  %v526_v33 = vsel %vm393_vm6, %v523_v15, %v525_v23 }
 0x181   :  { %v239_v25 = vpop.permute.xlu1 %238  ;;  %v183_v11 = vpop.permute.xlu0 %182  ;;  %v494_v27 = vadd.f32 %v490_v18, %v485_v58  ;;  %v520_v32 = vadd.f32 %v515_v12, %v511_v19  ;;  %v521_v36 = vadd.f32 %v517_v20, %v512_v17  ;;  %v535_v22 = vsel %vm403_vm7, %v532_v21, %v534_v26 }
 0x182   :  { %v533_v40 = vsel %vm403_vm7, %v531_v38, %v532_v21  ;;  %v495_v52 = vmul.f32 0.04, %v493_v35  ;;  %v187_v3 = vadd.f32 %v179_v9, %v966_v30  ;;  %v188_v4 = vadd.f32 %v181_v8, %v962_v29 }
 0x183   :  { %v529_v34 = vadd.f32 %v524_v28, %v520_v32  ;;  %v530_v39 = vadd.f32 %v526_v33, %v521_v36  ;;  %v496_v54 = vmul.f32 0.04, %v494_v27  ;;  %v189_v5 = vadd.f32 %v183_v11, %v974_v31 }
 0x184   :  { %v499_v63 = vsub.f32 %v495_v52, %v1020_v43  ;;  %v247_v10 = vadd.f32 %v239_v25, %v187_v3  ;;  %v623_v17 = vlaneseq }
 0x185   :  { %v243_v41 = vpop.permute.xlu1 %242  ;;  %v241_v51 = vpop.permute.xlu0 %240  ;;  %v538_v55 = vadd.f32 %v533_v40, %v529_v34  ;;  %v539_v56 = vadd.f32 %v535_v22, %v530_v39  ;;  %v500_v62 = vsub.f32 %v496_v54, %v1018_v42 }
 0x186   :  { %v249_v16 = vadd.f32 %v243_v41, %v189_v5  ;;  %v248_v23 = vadd.f32 %v241_v51, %v188_v4  ;;  %v624_v38 = vand.u32 127, %v623_v17 }
 0x187   :  { %v540_v59 = vmul.f32 0.04, %v538_v55  ;;  %v541_v60 = vmul.f32 0.04, %v539_v56 }
 0x188   :  { %vm636_vm8 = vcmp.ge.s32.totalorder %v624_v38, 20  ;;  %vm637_vm9 = vcmp.lt.s32.totalorder %v624_v38, 36  ;;  %vm626_vm10 = vcmp.lt.s32.totalorder %v624_v38, 16 }
 0x189   :  { %v301_v61 = vpop.permute.xlu1 %300  ;;  %v299_v37 = vpop.permute.xlu0 %298  ;;  %v544_v1 = vsub.f32 %v540_v59, %v1022_v44  ;;  %v545_v2 = vsub.f32 %v541_v60, %v1026_v46  ;;  %v605_v44 = vadd.f32 0.0001, %v1036_v50  ;;  %v606_v46 = vadd.f32 0.0001, %v1040_v53  ;;  %vm638_vm11 = vmand %vm636_vm8, %vm637_vm9 }
 0x18a   :  { %v307_v43 = vadd.f32 %v299_v37, %v247_v10  ;;  %v308_v57 = vadd.f32 %v301_v61, %v248_v23  ;;  %v595_v23 = vadd.f32 0.0001, %v1030_v48 }
 0x18b   :  { %v607_v6 = vadd.f32 %v544_v1, %v499_v63  ;;  %v608_v7 = vadd.f32 %v545_v2, %v500_v62 }
 0x18d   :  { %v359_v13 = vpop.permute.xlu1 %358  ;;  %v303_v14 = vpop.permute.xlu0 %302  ;;  %v609_v42 = vadd.f32 0.0009, %v607_v6  ;;  %v610_v24 = vadd.f32 0.0009, %v608_v7  ;;  %v634_v6 = vsel %vm626_vm10, 1.0, %v775_v0  ;;  %v644_v7 = vsel %vm638_vm11, 1.0, %v775_v0 }
 0x18e   :  { %v309_v30 = vadd.f32 %v303_v14, %v249_v16  ;;  %v367_v9 = vadd.f32 %v359_v13, %v307_v43 }
 0x18f   :  { %v611_v31 = vmul.f32 %v609_v42, %v605_v44  ;;  %v612_v15 = vmul.f32 %v610_v24, %v606_v46  ;;  %v596_v42 = vadd.f32 0.0001, %v1032_v49  ;;  %v645_v44 = vadd.f32 %v644_v7, %v634_v6 }
 0x190   :  { %v549_v26 = vrot.slane %v367_v9, 1  ;;  %v558_v25 = vrot.slane %v367_v9, 2  ;;  %v567_v27 = vrot.slane %v367_v9, 3  ;;  %v576_v41 = vrot.slane %v367_v9, 4 }
 0x191   :  { %v363_v29 = vpop.permute.xlu1 %362  ;;  %v361_v8 = vpop.permute.xlu0 %360  ;;  %695 = vrcp.f32 %v611_v31 }
 0x192   :  { %v369_v58 = vadd.f32 %v363_v29, %v309_v30  ;;  %v368_v18 = vadd.f32 %v361_v8, %v308_v57  ;;  %697 = vrcp.f32 %v612_v15 }
 0x194   :  { %v552_v19 = vrot.slane %v369_v58, 1  ;;  %v561_v12 = vrot.slane %v369_v58, 2  ;;  %v550_v20 = vrot.slane %v368_v18, 1  ;;  %v559_v21 = vrot.slane %v368_v18, 2 }
 0x195   :  { %v570_v50 = vrot.slane %v369_v58, 3  ;;  %v568_v35 = vrot.slane %v368_v18, 3  ;;  %v579_v28 = vrot.slane %v369_v58, 4  ;;  %v577_v39 = vrot.slane %v368_v18, 4 }
 0x196   :  { %v551_v53 = vsel %vm373_vm4, %v549_v26, %v550_v20  ;;  %v553_v11 = vsel %vm373_vm4, %v550_v20, %v552_v19  ;;  %v560_v33 = vsel %vm383_vm5, %v558_v25, %v559_v21  ;;  %v562_v34 = vsel %vm383_vm5, %v559_v21, %v561_v12 }
 0x197   :  { %v556_v32 = vadd.f32 %v551_v53, %v367_v9  ;;  %v557_v36 = vadd.f32 %v553_v11, %v368_v18  ;;  %v569_v51 = vsel %vm393_vm6, %v567_v27, %v568_v35  ;;  %v571_v52 = vsel %vm393_vm6, %v568_v35, %v570_v50 }
 0x198   :  { %v578_v59 = vsel %vm403_vm7, %v576_v41, %v577_v39  ;;  %v580_v60 = vsel %vm403_vm7, %v577_v39, %v579_v28 }
 0x199   :  { %v566_v40 = vadd.f32 %v562_v34, %v557_v36  ;;  %v565_v22 = vadd.f32 %v560_v33, %v556_v32 }
 0x19b   :  { %v574_v54 = vadd.f32 %v569_v51, %v565_v22  ;;  %v575_v55 = vadd.f32 %v571_v52, %v566_v40  ;;  %v696_v56 = vpop.eup %695 }
 0x19c   :  { %v698_v62 = vpop.eup %697  ;;  %v615_v2 = vmul.f32 %v696_v56, %v611_v31 }
 0x19d   :  { %v583_v61 = vadd.f32 %v578_v59, %v574_v54  ;;  %v584_v37 = vadd.f32 %v580_v60, %v575_v55  ;;  %v616_v3 = vmul.f32 %v698_v62, %v612_v15 }
 0x19e   :  { %v617_v14 = vsub.f32 2.0, %v615_v2 }
 0x19f   :  { %v585_v63 = vmul.f32 0.04, %v583_v61  ;;  %v586_v1 = vmul.f32 0.04, %v584_v37  ;;  %v618_v16 = vsub.f32 2.0, %v616_v3 }
 0x1a1   :  { %v589_v4 = vsub.f32 %v585_v63, %v1024_v45  ;;  %v590_v5 = vsub.f32 %v586_v1, %v1028_v47  ;;  %v619_v45 = vmul.f32 %v696_v56, %v617_v14  ;;  %v620_v30 = vmul.f32 %v698_v62, %v618_v16 }
 0x1a3   :  { %v597_v10 = vmul.f32 2.0, %v589_v4  ;;  %v598_v13 = vmul.f32 2.0, %v590_v5 }
 0x1a5   :  { %v599_v24 = vadd.f32 0.0009, %v597_v10  ;;  %v600_v43 = vadd.f32 0.0009, %v598_v13 }
 0x1a7   :  { %v601_v46 = vmul.f32 %v599_v24, %v595_v23  ;;  %v602_v57 = vmul.f32 %v600_v43, %v596_v42 }
 0x1a9   :  { %v621_v47 = vmul.f32 %v619_v45, %v601_v46  ;;  %v622_v9 = vmul.f32 %v620_v30, %v602_v57 }
 0x1ab   :  { %v646_v29 = vmul.f32 %v645_v44, %v621_v47  ;;  %v647_v0 = vmul.f32 %v645_v44, %v622_v9 }
 0x1ad   :  { %v649_v8 = vsel %vm648_vm12, %v646_v29, 0.0  ;;  %v650_v31 = vsel %vm648_vm12, %v647_v0, 0.0 }
 0x1ae   :  { %v651_v15 = vadd.f32 %v650_v31, %v649_v8 }
 0x1b0   :  { %652 = vadd.xlane.f32.xlu0 %v651_v15 }
 0x23d   :  { %v653_v58 = vpop.xlane.xlu0 %652 }
 0x23e   :  { %v654_v48 = vrot.slane %v653_v58, 4 }
 0x240   :  { %v655_v18 = vadd.f32 %v654_v48, %v653_v58 }
 0x242   :  { %v656_v49 = vrot.slane %v655_v18, 2 }
 0x244   :  { %v657_v19 = vadd.f32 %v656_v49, %v655_v18 }
 0x246   :  { %v658_v17 = vrot.slane %v657_v19, 1 }
 0x248   :  { %v659_v26 = vadd.f32 %v658_v17, %v657_v19 }
 0x24a   :  { %681 = vpush %v659_v26 }
 0x27b   :  { %s682_s13 = spop %681 }
 0x27c   :  { %s661_s14 = smul.f32 0.00390625, %s682_s13 }
 0x27e   :  { %v662_v12 = vstv %s661_s14 }
 0x27f   :  { %664 = vst [vmem:[#allocation9] sm:$0x1] %v662_v12 }
 0x280   :  { %754 = shalt.err (!%p751_p6)
}
 0x281   :  { %s755_s19 = scalar_lea.hbm %s1101_s2, 16 }
 0x282   :  { %p756_p7 = scmp.ne.s32.totalorder %s1101_s2, %s755_s19  ;;  %p759_p8 = scmp.lt.u32.totalorder %s755_s19, %s1101_s2 }
 0x284   :  { %p761_p9 = pnand %p759_p8, %p756_p7 }
 0x286   :  { %764 = shalt.err (!%p761_p9)
}
 0x287   :  { %674 = dma.vmem_to_hbm [thread:$0]  %s672_s12, 16, %s1101_s2, [#allocation6]  }
 0x288   :  { %769 = dma.done.wait [#allocation6], 16  }
 0x289   :  { %770 = vsyncadd [#allocation6], 4294967280 }
 0x28a   :  { %678 = vsyncpa [#allocation5], 1 }
 0x28b   :  { %679 = vsyncpa [#allocation8], 1 }
 0x28c   :  { %680 = vsyncpa [#allocation6], 1 }

</bundles_post_ra>
